<compile_context>
chip_gen: v6e
topology: v6e:2x2x1
jax: 0.10.0
libtpu: 0.0.40
codegen_flags: <defaults>
</compile_context>

<pallas_src>
import jax
import jax.numpy as jnp
from jax.experimental import pallas as pl
from jax.experimental.pallas import tpu as pltpu


# --------------------------------------------------------------------------- #
# Host-side constant construction
# --------------------------------------------------------------------------- #
def _round_up(a, b):
    return -(-a // b) * b


def _lpf_matrix(n, sigma):
    """Real n x n operator A = Re( IDFT_n . diag(mask) . DFT_n ).

    mask is the *unshifted* 1-D gaussian factor (the ifftshift of the torch
    mask's separable factor).  A is exactly real because mask is real & even:
        A[a, b] = (1/n) * sum_k mask[k] * cos(2*pi*k*(a-b)/n)
    """
    freqs = jnp.fft.fftfreq(n).astype(jnp.float32)
    m = jnp.exp(-0.5 * jnp.square(freqs / sigma))                 # (n,)
    j = jnp.arange(n, dtype=jnp.float32)
    # keep angles in [0, 2*pi) so f32 cos/sin stay accurate for large n
    phase = jnp.mod(jnp.outer(j, j), n) * (2.0 * jnp.pi / n)      # (n, n)
    c, s = jnp.cos(phase), jnp.sin(phase)
    a = (c * m[None, :]) @ c.T + (s * m[None, :]) @ s.T           # sum_k m[k] cos(2pi k (a-b)/n)
    return (a / n).astype(jnp.float32)


# --------------------------------------------------------------------------- #
# Kernels
# --------------------------------------------------------------------------- #
def _kron_matmul_kernel(x_ref, k_ref, o_ref):
    # (TB, H*W) @ (H*W, TN) -> (TB, TN): whole batch block, lane-dense in & out.
    o_ref[...] = jnp.dot(x_ref[...], k_ref[...],
                         preferred_element_type=jnp.float32)


def _separable_kernel(x_ref, ahbd_ref, aw_ref, o_ref):
    # Column (W) transform: one big (TB*H, W) @ (W, W) matmul.
    t = jnp.dot(x_ref[...], aw_ref[...], preferred_element_type=jnp.float32)
    # Row (H) transform for every image in the block via the block-diagonal
    # (I_TB kron A_H) matrix: a single plain 2-D matmul, no batched dot needed.
    o_ref[...] = jnp.dot(ahbd_ref[...], t, preferred_element_type=jnp.float32)


# --------------------------------------------------------------------------- #
# Wrappers
# --------------------------------------------------------------------------- #
def _lpf_fused_small(x, ah, aw):
    """Small-image path: Y_flat = X_flat @ (A_H^T kron A_W), one matmul per block."""
    B, H, W = x.shape
    hw = H * W
    kmat = jnp.kron(ah.T, aw)                 # (hw, hw); K[bW+c, aW+d] = A_H[a,b]*A_W[c,d]
    xf = x.reshape(B, hw)

    tb = min(_round_up(B, 8), 128)            # rows per grid step (sublane aligned)
    bpad = _round_up(B, tb)
    if bpad != B:
        xf = jnp.pad(xf, ((0, bpad - B), (0, 0)))
    # Split the output columns so the grid has >= 2 steps (keeps both v7x TCs busy).
    tn = 128 if (hw % 128 == 0 and hw > 128) else hw
    grid = (bpad // tb, hw // tn)

    cost = pl.CostEstimate(flops=2 * bpad * hw * hw,
                           transcendentals=0,
                           bytes_accessed=4 * (2 * bpad * hw + hw * hw))
    out = pl.pallas_call(
        _kron_matmul_kernel,
        out_shape=jax.ShapeDtypeStruct((bpad, hw), jnp.float32),
        grid_spec=pltpu.PrefetchScalarGridSpec(
            num_scalar_prefetch=0,
            grid=grid,
            in_specs=[
                pl.BlockSpec((tb, hw), lambda i, j: (i, 0)),   # x rows (revisited over j)
                pl.BlockSpec((hw, tn), lambda i, j: (0, j)),   # kron matrix columns
            ],
            out_specs=pl.BlockSpec((tb, tn), lambda i, j: (i, j)),
        ),
        compiler_params=pltpu.CompilerParams(
            dimension_semantics=("parallel", "parallel")),
        cost_estimate=cost,
    )(xf, kmat)
    return out[:B].reshape(B, H, W)


def _lpf_separable(x, ah, aw):
    """Large-image path: per block of TB images, Y = (I kron A_H) @ (X_rows @ A_W)."""
    B, H, W = x.shape
    # TB images per grid step so the matmul M-dim is >= 128 rows.
    tb = max(1, 128 // H)
    if H % 8 != 0:
        tb = B            # keep row-block == full array so block shapes stay legal
    bpad = _round_up(B, tb)
    if bpad != B:
        x = jnp.pad(x, ((0, bpad - B), (0, 0), (0, 0)))
    tbh = tb * H
    ahbd = jnp.kron(jnp.eye(tb, dtype=jnp.float32), ah)    # (tbh, tbh) block-diagonal
    x_rows = x.reshape(bpad * H, W)                        # free host reshape
    nblk = bpad // tb

    cost = pl.CostEstimate(
        flops=2 * nblk * (tbh * W * W + tbh * tbh * W),
        transcendentals=0,
        bytes_accessed=4 * (2 * bpad * H * W + tbh * tbh + W * W))
    out = pl.pallas_call(
        _separable_kernel,
        out_shape=jax.ShapeDtypeStruct((bpad * H, W), jnp.float32),
        grid_spec=pltpu.PrefetchScalarGridSpec(
            num_scalar_prefetch=0,
            grid=(nblk,),
            in_specs=[
                pl.BlockSpec((tbh, W), lambda i: (i, 0)),      # TB images, flat rows
                pl.BlockSpec((tbh, tbh), lambda i: (0, 0)),    # I_TB kron A_H (resident)
                pl.BlockSpec((W, W), lambda i: (0, 0)),        # A_W (resident)
            ],
            out_specs=pl.BlockSpec((tbh, W), lambda i: (i, 0)),
        ),
        compiler_params=pltpu.CompilerParams(
            dimension_semantics=("parallel",),
            vmem_limit_bytes=48 * 1024 * 1024),   # < v7x's 64 MiB physical VMEM
        cost_estimate=cost,
    )(x_rows, ahbd, aw)
    return out[: B * H].reshape(B, H, W)


def gaussian_lpf(x_nchw, sigma):
    """x_nchw: (N, C, H, W) float.  Returns the gaussian-low-pass-filtered image."""
    N, C, H, W = x_nchw.shape
    assert H == W, "torch module's mask broadcast requires square spatial dims"
    B = N * C
    x = x_nchw.reshape(B, H, W).astype(jnp.float32)

    ah = _lpf_matrix(H, sigma)     # row-side operator
    aw = _lpf_matrix(W, sigma)     # column-side operator

    if H * W <= 1024:              # Kronecker constant stays <= 4 MiB
        y = _lpf_fused_small(x, ah, aw)
    else:
        y = _lpf_separable(x, ah, aw)
    return y.reshape(N, C, H, W)


# --------------------------------------------------------------------------- #
# Reference (direct jnp.fft transliteration of the torch module) + test
# --------------------------------------------------------------------------- #
def _reference(x_nchw, sigma):
    ft = jnp.fft.fftshift(jnp.fft.fft2(x_nchw))
    m = jnp.fft.fftshift(jnp.fft.fftfreq(ft.shape[2]))
    n = jnp.fft.fftshift(jnp.fft.fftfreq(ft.shape[3]))
    l, k = jnp.meshgrid(n, m, indexing="ij")
    d = jnp.sqrt(k ** 2 + l ** 2)
    g = jnp.exp(-0.5 * (d / sigma) ** 2)
    ft = g * ft
    return jnp.real(jnp.fft.ifft2(jnp.fft.ifftshift(ft)))


if __name__ == "__main__":
    sigma = 0.1

    # Small-image case (module's typical usage; exercises the fused Kronecker path).
    x = jax.random.normal(jax.random.PRNGKey(0), (2, 4, 16, 16), dtype=jnp.float32)
    # The module takes/returns a list [noised_image, cover]; only element 0 is touched.
    noise_and_cover = [x, x]
    y = gaussian_lpf(noise_and_cover[0], sigma)
    noise_and_cover[0] = y
    jax.block_until_ready(y)
    y_ref = _reference(x, sigma)
    assert jnp.allclose(y, y_ref, atol=2e-3, rtol=1e-3), "small-path mismatch vs fft reference"

    # Larger spatial size (exercises the separable two-matmul path).
    x2 = jax.random.normal(jax.random.PRNGKey(1), (1, 2, 64, 64), dtype=jnp.float32)
    y2 = gaussian_lpf(x2, sigma)
    jax.block_until_ready(y2)
    y2_ref = _reference(x2, sigma)
    assert jnp.allclose(y2, y2_ref, atol=2e-3, rtol=1e-3), "separable-path mismatch vs fft reference"

    print("KERNEL_OK")
</pallas_src>

<mosaic_0001>
module attributes {stable_mosaic.version = 11 : i64} {
  func.func @_kron_matmul_kernel(%arg0: i32, %arg1: i32, %arg2: memref<8x256xf32, #tpu.memory_space<vmem>>, %arg3: memref<256x128xf32, #tpu.memory_space<vmem>>, %arg4: memref<8x128xf32, #tpu.memory_space<vmem>>) attributes {dimension_semantics = [#tpu.dimension_semantics<parallel>, #tpu.dimension_semantics<parallel>], iteration_bounds = array<i64: 1, 2>, scalar_prefetch = 0 : i64, scratch_operands = 0 : i64, tpu.core_type = #tpu.core_type<tc>, window_params = [{transform_indices = @transform_0, window_bounds = array<i64: 8, 256>}, {transform_indices = @transform_1, window_bounds = array<i64: 256, 128>}, {transform_indices = @transform_2, window_bounds = array<i64: 8, 128>}]} {
    %c0 = arith.constant 0 : index
    %c0_0 = arith.constant 0 : index
    %0 = vector.load %arg2[%c0, %c0_0] : memref<8x256xf32, #tpu.memory_space<vmem>>, vector<8x256xf32>
    %c0_1 = arith.constant 0 : index
    %c0_2 = arith.constant 0 : index
    %1 = vector.load %arg3[%c0_1, %c0_2] : memref<256x128xf32, #tpu.memory_space<vmem>>, vector<256x128xf32>
    %cst = arith.constant dense<0.000000e+00> : vector<8x128xf32>
    %2 = tpu.matmul %0, %1, %cst {dimension_numbers = #tpu.dot_dimension_numbers<[1], [0], [0], [1], [0, 0, 1, 1], [], []>} : vector<8x256xf32>, vector<256x128xf32>, vector<8x128xf32> -> vector<8x128xf32>
    %c0_3 = arith.constant 0 : index
    %c0_4 = arith.constant 0 : index
    %3 = vector.load %arg4[%c0_3, %c0_4] : memref<8x128xf32, #tpu.memory_space<vmem>>, vector<8x128xf32>
    tpu.vector_store %arg4[%c0_3, %c0_4], %2 {strides = array<i32>} : memref<8x128xf32, #tpu.memory_space<vmem>>, vector<8x128xf32>,
    return
  }
  func.func @transform_0(%arg0: i32, %arg1: i32) -> (i32, i32) {
    %c0_i32 = arith.constant 0 : i32
    %c0_i32_0 = arith.constant 0 : i32
    return %arg0, %c0_i32 : i32, i32
  }
  func.func @transform_1(%arg0: i32, %arg1: i32) -> (i32, i32) {
    %c0_i32 = arith.constant 0 : i32
    %c0_i32_0 = arith.constant 0 : i32
    return %c0_i32, %arg1 : i32, i32
  }
  func.func @transform_2(%arg0: i32, %arg1: i32) -> (i32, i32) {
    %c0_i32 = arith.constant 0 : i32
    return %arg0, %arg1 : i32, i32
  }
}

</mosaic_0001>

<bundles_post_ra>
// kernel: tpu_custom_call.1
= control target key start
LH: loop header
LB: loop body
LE: loop exit
PB: predicated region body
PF: predicated region fallthrough
CT: control target
= control target key end

     0   :  { %7 = vsyncpa [#allocation3], 0  ;;  %s896_s0 = inlined_call_operand.hbm [shape: f32[8,256], index: 0, kind: input, shape index: {}]   ;;  %s897_s1 = inlined_call_operand.hbm [shape: f32[256,256], index: 1, kind: input, shape index: {}]   ;;  %s898_s2 = inlined_call_operand.hbm [shape: f32[8,256], index: 2, kind: output, shape index: {}]  }
   0x1   :  { %8 = vsyncpa [#allocation6], 0 }
   0x2   :  { %10 = vsyncpa [#allocation6 + $0x1], 0 }
   0x3   :  { %11 = vsyncpa [#allocation4], 0 }
   0x4   :  { %13 = vsyncpa [#allocation4 + $0x1], 0  ;;  %s698_s9 = smov 0   ;;  %s700_s10 = smov 0  }
   0x5   :  { %s702_s11 = smov 0   ;;  %s704_s12 = smov 0  }
   0x6   :  { %s706_s13 = smov 0   ;;  %s708_s14 = smov 0  }
   0x7 LB: > { %s411_s15 = sadd.s32 4294967295, %s675_s14   ;;  %s412_s16 = sadd.s32 4294967294, %s675_s14   ;;  %s675_s14 = sphi %s708_s14, %s19_s14   ;;  %s671_s13 = sphi %s706_s13, %s917_s13   ;;  %s667_s12 = sphi %s704_s12, %s916_s12   ;;  %s663_s11 = sphi %s702_s11, %s915_s11   ;;  %s659_s10 = sphi %s700_s10, %s914_s10   ;;  %s655_s9 = sphi %s698_s9, %s913_s9  }
   0x8   : > { %s64_s17 = sadd.s32 1, %s663_s11  ;;  %p71_p0 = scmp.ne.s32.totalorder %s663_s11, %s659_s10 }
   0x9   : > { %p72_p1 = scmp.eq.s32.totalorder %s675_s14, 0  ;;  %p77_p2 = scmp.ne.s32.totalorder %s659_s10, %s655_s9 }
   0xa   : > { %p736_p3 = scmp.eq.s32.totalorder %s411_s15, 0  ;;  %p103_p4 = scmp.eq.s32.totalorder %s411_s15, 1 }
   0xb   : > { %p740_p5 = por %p72_p1, %p71_p0  ;;  %p109_p6 = scmp.eq.s32.totalorder %s412_s16, 1 }
   0xc   : > { %p746_p7 = por %p736_p3, %p77_p2  ;;  %p750_p8 = por %p103_p4, %p71_p0 }
   0xd   : > { %p754_p9 = por %p109_p6, %p77_p2  ;;  %p413_p10 = scmp.ge.s32.totalorder %s675_s14, 1 }
   0xe   : > { %s903_s20 = scalar_select %p746_p7, 1, 0 }
   0xf   : > { %s904_s21 = scalar_select %p750_p8, 1, 0 }
  0x10   : > { %s905_s22 = scalar_select %p754_p9, 1, 0 }
  0x11   : > { %p116_p11 = scmp.lt.s32.totalorder %s675_s14, 3  ;;  %s677_s24 = smov [#allocation2]  }
  0x12   : > { %s132_s25 = sshll.u32 %s677_s24, 4  ;;  %p482_p1 = scmp.lt.s32.totalorder %s675_s14, 2  ;;  %s133_s25 = int_to_ptr.vmem [resolvable:$true] %s132_s25 }
  0x13   : > { %p761_p13 = pnand %p413_p10, %p116_p11  ;;  %s28_s28 = sadd.s32 1, %s671_s13 }
  0x14   : > { %p770_p4 = pnand %p482_p1, %p740_p5  ;;  %p29_p6 = scmp.ge.s32.totalorder %s28_s28, 2 }
  0x15   : > { %p469_p0 = pneg %p761_p13  ;;  %s143_s29 = sand.u32 1, %s663_s11  }
  0x16   : > { %s548_s30 = scalar_lea.vmem %s133_s25, 256  ;;  %p556_p8 = scmp.lt.s32.totalorder %s133_s25, %s133_s25 }
  0x17   : > { %p776_p2 = pnand %p469_p0, %p736_p3  ;;  %p549_p11 = scmp.ne.s32.totalorder %s133_s25, %s548_s30 }
  0x18   : > { %p557_p5 = scmp.lt.s32.totalorder %s548_s30, %s548_s30 }
  0x19   : > { %p539_p10 = pneg %p776_p2 }
  0x1a   : > { %p558_p1 = por %p557_p5, %p556_p8 }
  0x1b   : > { %p551_p12 = pnand %p549_p11, %p539_p10 }
  0x1d   : > { %p552_p9 = pneg %p551_p12 }
  0x1f   : > { %p559_p7 = pnand %p558_p1, %p552_p9 }
  0x21   : > { %562 = shalt.err (!%p559_p7)
}
  0x22   : > { %472 = dma.hbm_to_vmem [thread:$0]  (!%p776_p2), %s896_s0, 256, %s133_s25, [#allocation3]  }
  0x23   : > { %s919_s28 = smov (%p29_p6, %s28_s28), 0  ;;  %s416_s5 = sshll.u32 %s143_s29, 8 }
  0x24   : > { %s61_s6 = ssub.s32 %s671_s13, %s919_s28  ;;  %s417_s7 = sshll.u32 %s671_s13, 7 }
  0x25   : > { %p62_p12 = scmp.eq.s32.totalorder %s61_s6, 0  ;;  %s152_s16 = scalar_lea.hbm %s897_s1, %s417_s7 }
  0x26   : > { %s147_s19 = scalar_lea.vmem [#allocation5], %s416_s5  ;;  %s144_s30 = scalar_lea.sflag [#allocation6], %s143_s29 }
  0x27   : > { %s153_s24 = sshll.u32 %s147_s19, 4  ;;  %p565_p7 = pneg %p770_p4  ;;  %s154_s24 = int_to_ptr.vmem [resolvable:$true] %s153_s24 }
  0x28   : > { %s800_s27 = scalar_select %p62_p12, %s663_s11, %s64_s17  }
  0x29   : > { %s576_s25 = scalar_lea.vmem %s154_s24, 4096  ;;  %s678_s3 = smov [#allocation5]  }
  0x2a   : > { %p577_p8 = scmp.ne.s32.totalorder %s154_s24, %s576_s25  ;;  %s581_s4 = sshll.u32 %s678_s3, 4  ;;  %s582_s4 = int_to_ptr.vmem [resolvable:$false] %s581_s4 }
  0x2b   : > { %s583_s6 = scalar_lea.vmem %s582_s4, 8192  ;;  %p584_p2 = scmp.lt.s32.totalorder %s154_s24, %s582_s4 }
  0x2c   : > { %p579_p9 = pnand %p577_p8, %p565_p7  ;;  %p585_p6 = scmp.lt.s32.totalorder %s583_s6, %s576_s25 }
  0x2e   : > { %p580_p0 = pneg %p579_p9  ;;  %p586_p10 = por %p585_p6, %p584_p2 }
  0x30   : > { %p587_p11 = pnand %p586_p10, %p580_p0 }
  0x32   : > { %590 = shalt.err (!%p587_p11)
}
  0x33   : > { %s679_s5 = smov 256   ;;  %s680_s17 = smov 128  }
  0x34   : > { %s681_s7 = smov 8   ;;  %165 = sbr.rel (%p761_p13) target bundleno = 305 (0x131), region = 28 }
  0x35   : > { %476 = dma.hbm_to_vmem [thread:$0]  (!%p770_p4), %s152_s16, 4096, %s154_s24, %s144_s30, %s679_s5, %s680_s17, %s681_s7  }
  0x39   : > { %642 = dma.done.wait (%p736_p3), [#allocation3], 256  }
  0x3a   : > { %644 = vsyncadd (%p736_p3), [#allocation3], 4294967040  ;;  %s813_s29 = sand.u32 1, %s659_s10   ;;  %p909_p4 = scmp.ne.s32.totalorder %s903_s20, 0 }
  0x3b   : > { %s420_s8 = sshll.u32 %s813_s29, 8  ;;  %s172_s15 = scalar_lea.sflag [#allocation6], %s813_s29 }
  0x3c   : > { %s817_s19 = scalar_lea.vmem [#allocation5], %s420_s8 }
  0x3d   : > { %646 = dma.done.wait (%p909_p4), %s172_s15, 4096  }
  0x3e   : > { %648 = vsyncadd (%p909_p4), %s172_s15, 4294963200  ;;  %v229_v0 = vld [vmem:[%s817_s19 + $0xf8] sm:$0xff]  ;;  %v228_v2 = vld [vmem:[%s817_s19 + $0xf0] sm:$0xff]  ;;  %s421_s18 = sshll.u32 %s813_s29, 3  ;;  %s423_s20 = sshll.u32 %s667_s12, 7 }
  0x3f   : > { %v213_v1 = vld [vmem:[%s817_s19 + $0x78] sm:$0xff]  ;;  %426 = vmatprep.subr.mxu0 %v229_v0  ;;  %v212_v3 = vld [vmem:[%s817_s19 + $0x70] sm:$0xff]  ;;  %v227_v4 = vld [vmem:[%s817_s19 + $0xe8] sm:$0xff]  ;;  %s195_s23 = scalar_lea.vmem [#allocation7], %s421_s18  ;;  %s315_s30 = scalar_lea.hbm %s898_s2, %s423_s20 }
  0x40   : > { %427 = vmatpush3.msra.mxu0 %v213_v1  ;;  %v211_v5 = vld [vmem:[%s817_s19 + $0x68] sm:$0xff]  ;;  %v226_v6 = vld [vmem:[%s817_s19 + $0xe0] sm:$0xff]  ;;  %v225_v8 = vld [vmem:[%s817_s19 + $0xd8] sm:$0xff]  ;;  %s317_s26 = sshll.u32 %s195_s23, 4  ;;  %s302_s25 = scalar_lea.sflag [#allocation4], %s813_s29  ;;  %s318_s26 = int_to_ptr.vmem [resolvable:$true] %s317_s26 }
  0x41   : > { %428 = vmatprep.subr.mxu0 %v228_v2  ;;  %v210_v7 = vld [vmem:[%s817_s19 + $0x60] sm:$0xff]  ;;  %v209_v9 = vld [vmem:[%s817_s19 + $0x58] sm:$0xff]  ;;  %v224_v10 = vld [vmem:[%s817_s19 + $0xd0] sm:$0xff]  ;;  %s591_s3 = scalar_lea.vmem %s318_s26, 128  ;;  %p910_p13 = scmp.ne.s32.totalorder %s904_s21, 0 }
  0x42   : > { %429 = vmatpush3.msra.mxu0 %v212_v3  ;;  %v208_v11 = vld [vmem:[%s817_s19 + $0x50] sm:$0xff]  ;;  %v223_v12 = vld [vmem:[%s817_s19 + $0xc8] sm:$0xff]  ;;  %v197_v13 = vld [vmem:[#allocation2 + $0x8] sm:$0xff]  ;;  %p592_p3 = scmp.ne.s32.totalorder %s318_s26, %s591_s3  ;;  %s682_s4 = smov [#allocation7]  }
  0x43   : > { %430 = vmatprep.subr.mxu0 %v227_v4  ;;  %v207_v14 = vld [vmem:[%s817_s19 + $0x48] sm:$0xff]  ;;  %294 = vmatprep.mubr.f32.mxu0 %v197_v13  ;;  %v222_v15 = vld [vmem:[%s817_s19 + $0xc0] sm:$0xff]  ;;  %v221_v17 = vld [vmem:[%s817_s19 + $0xb8] sm:$0xff]  ;;  %s595_s6 = sshll.u32 %s682_s4, 4  ;;  %s596_s6 = int_to_ptr.vmem [resolvable:$false] %s595_s6 }
  0x44   : > { %431 = vmatpush3.msra.mxu0 %v211_v5  ;;  %v206_v16 = vld [vmem:[%s817_s19 + $0x40] sm:$0xff]  ;;  %v205_v18 = vld [vmem:[%s817_s19 + $0x38] sm:$0xff]  ;;  %v220_v19 = vld [vmem:[%s817_s19 + $0xb0] sm:$0xff]  ;;  %p593_p5 = pnand %p592_p3, %p910_p13  ;;  %s597_s12 = scalar_lea.vmem %s596_s6, 256 }
  0x45   : > { %432 = vmatprep.subr.mxu0 %v226_v6  ;;  %v204_v20 = vld [vmem:[%s817_s19 + $0x30] sm:$0xff]  ;;  %v219_v21 = vld [vmem:[%s817_s19 + $0xa8] sm:$0xff]  ;;  %v218_v23 = vld [vmem:[%s817_s19 + $0xa0] sm:$0xff]  ;;  %p598_p12 = scmp.lt.s32.totalorder %s318_s26, %s596_s6  ;;  %p599_p7 = scmp.lt.s32.totalorder %s597_s12, %s591_s3 }
  0x46   : > { %433 = vmatpush3.msra.mxu0 %v210_v7  ;;  %v203_v22 = vld [vmem:[%s817_s19 + $0x28] sm:$0xff]  ;;  %v202_v24 = vld [vmem:[%s817_s19 + $0x20] sm:$0xff]  ;;  %v217_v25 = vld [vmem:[%s817_s19 + $0x98] sm:$0xff]  ;;  %p594_p1 = pneg %p593_p5 }
  0x47   : > { %434 = vmatprep.subr.mxu0 %v225_v8  ;;  %v201_v26 = vld [vmem:[%s817_s19 + $0x18] sm:$0xff]  ;;  %v216_v27 = vld [vmem:[%s817_s19 + $0x90] sm:$0xff]  ;;  %v215_v29 = vld [vmem:[%s817_s19 + $0x88] sm:$0xff]  ;;  %p600_p8 = por %p599_p7, %p598_p12 }
  0x48   : > { %435 = vmatpush3.msra.mxu0 %v209_v9  ;;  %v200_v28 = vld [vmem:[%s817_s19 + $0x10] sm:$0xff]  ;;  %v199_v30 = vld [vmem:[%s817_s19 + $0x8] sm:$0xff]  ;;  %v214_v31 = vld [vmem:[%s817_s19 + $0x80] sm:$0xff] }
  0x49   : > { %436 = vmatprep.subr.mxu0 %v224_v10  ;;  %v198_v32 = vld [vmem:[%s817_s19] sm:$0xff]  ;;  %v196_v33 = vld [vmem:[#allocation2] sm:$0xff]  ;;  %p601_p9 = pnand %p600_p8, %p594_p1 }
  0x4a   : > { %437 = vmatpush3.msra.mxu0 %v208_v11 }
  0x4b   : > { %438 = vmatprep.subr.mxu0 %v223_v12 }
  0x4c   : > { %439 = vmatpush3.msra.mxu0 %v207_v14 }
  0x4d   : > { %440 = vmatprep.subr.mxu0 %v222_v15 }
  0x4e   : > { %441 = vmatpush3.msra.mxu0 %v206_v16 }
  0x4f   : > { %442 = vmatprep.subr.mxu0 %v221_v17 }
  0x50   : > { %443 = vmatpush3.msra.mxu0 %v205_v18 }
  0x51   : > { %444 = vmatprep.subr.mxu0 %v220_v19 }
  0x52   : > { %445 = vmatpush3.msra.mxu0 %v204_v20 }
  0x53   : > { %446 = vmatprep.subr.mxu0 %v219_v21 }
  0x54   : > { %447 = vmatpush3.msra.mxu0 %v203_v22 }
  0x55   : > { %448 = vmatprep.subr.mxu0 %v218_v23 }
  0x56   : > { %449 = vmatpush3.msra.mxu0 %v202_v24 }
  0x57   : > { %450 = vmatprep.subr.mxu0 %v217_v25 }
  0x58   : > { %451 = vmatpush3.msra.mxu0 %v201_v26 }
  0x59   : > { %452 = vmatprep.subr.mxu0 %v216_v27 }
  0x5a   : > { %453 = vmatpush3.msra.mxu0 %v200_v28 }
  0x5b   : > { %454 = vmatprep.subr.mxu0 %v215_v29 }
  0x5c   : > { %455 = vmatpush3.msra.mxu0 %v199_v30 }
  0x5d   : > { %456 = vmatprep.subr.mxu0 %v214_v31 }
  0x5e   : > { %457 = vmatpush3.msra.mxu0 %v198_v32 }
  0x5f   : > { %295 = vmatmul.mubr.f32.vlgmr.msra.gmra.mxu0 %v196_v33 }
 0x11f   : > { %v458_v34 = vpop.f32.mrf.mxu0 }
 0x121   : > { %v459_v35 = vpop.f32.mrf.mxu0 }
 0x122   : > { %v460_v36 = vadd.f32 %v459_v35, %v458_v34 }
 0x124   : > { %300 = vst [vmem:[%s195_s23] sm:$0xff] %v460_v36 }
 0x125   : > { %604 = shalt.err (!%p601_p9)
}
 0x126   : > { %s605_s5 = scalar_lea.hbm %s315_s30, 128  ;;  %s609_s29 = scalar_lea.hbm %s898_s2, 256 }
 0x127   : > { %p606_p0 = scmp.ne.s32.totalorder %s315_s30, %s605_s5  ;;  %p610_p10 = scmp.lt.s32.totalorder %s315_s30, %s898_s2 }
 0x128   : > { %p611_p11 = scmp.lt.s32.totalorder %s609_s29, %s605_s5 }
 0x129   : > { %p607_p2 = pnand %p606_p0, %p910_p13 }
 0x12a   : > { %p612_p4 = por %p611_p11, %p610_p10 }
 0x12b   : > { %p608_p6 = pneg %p607_p2 }
 0x12d   : > { %p613_p3 = pnand %p612_p4, %p608_p6 }
 0x12f   : > { %616 = shalt.err (!%p613_p3)
}
 0x130   : > { %467 = dma.vmem_to_hbm [thread:$0]  (%p910_p13), %s318_s26, 128, %s315_s30, %s302_s25  }
 0x131 PF: > { %s329_s19 = sand.u32 1, %s655_s9   ;;  %p911_p5 = scmp.ne.s32.totalorder %s905_s22, 0 }
 0x132   : > { %p912_p1 = scmp.ge.s32.totalorder %s675_s14, 2  ;;  %s330_s18 = scalar_lea.sflag [#allocation4], %s329_s19 }
 0x134   : > { %p478_p12 = pnand %p912_p1, %p911_p5 }
 0x136   : > { %p479_p7 = pneg %p478_p12 }
 0x138   : > { %650 = dma.done.wait (%p479_p7), %s330_s18, 128  }
 0x139   : > { %652 = vsyncadd (%p479_p7), %s330_s18, 4294967168  ;;  %s19_s14 = sadd.s32 1, %s675_s14   ;;  %s913_s9 = smov %s659_s10 }
 0x13a   : > { %p16_p8 = scmp.ge.s32.totalorder %s19_s14, 4   ;;  %s914_s10 = smov %s663_s11 }
 0x13b   : > { %s915_s11 = smov %s800_s27  ;;  %s916_s12 = smov %s671_s13 }
 0x13c   : > { %s917_s13 = smov %s919_s28  ;;  %18 = sbr.rel (!%p16_p8) target bundleno = 7 (0x7), region = 79 }
 0x141   :  { %335 = vsyncpa [#allocation3], 1 }
 0x142   :  { %337 = vsyncpa [#allocation3 + $0x1], 1 }
 0x143   :  { %338 = vsyncpa [#allocation6], 1 }
 0x144   :  { %340 = vsyncpa [#allocation6 + $0x1], 1 }
 0x145   :  { %341 = vsyncpa [#allocation4], 1 }
 0x146   :  { %343 = vsyncpa [#allocation4 + $0x1], 1 }

</bundles_post_ra>
